<compile_context>
chip_gen: v7x
topology: tpu7x:2x2x1
jax: 0.10.0
libtpu: 0.0.40
codegen_flags: <defaults>
</compile_context>

<pallas_src>
import jax
import jax.numpy as jnp
from jax.experimental import pallas as pl
from jax.experimental.pallas import tpu as pltpu


def _readjustment_kernel(bias_ref, x_ref, o_ref):
    # bias_ref: SMEM scalar (shape (1,)); x_ref/o_ref: VMEM (tb, N) tiles.
    bias = bias_ref[0]

    # relu(x - adjust_bias)
    y = jnp.maximum(x_ref[...] - bias, 0.0)

    # Per-row (per-sample) min / max over the flattened C*H*W axis (XLU).
    mn = jnp.min(y, axis=-1, keepdims=True)
    mx = jnp.max(y, axis=-1, keepdims=True)

    # scale = max - min + 1e-4 ; normalize via reciprocal + multiply.
    # approx=False keeps the result within ~1 ULP of true division; the
    # operand is only (tb, 1) so approx mode would save essentially nothing.
    inv = pl.reciprocal(mx - mn + jnp.float32(0.0001), approx=False)

    # Single store; no read-back of o_ref.
    o_ref[...] = (y - mn) * inv


def readjustment(x, adjust_bias, *, target_block_bytes=6 * 1024 * 1024):
    """x: (B, C, H, W) float32 NCHW; adjust_bias: scalar float32."""
    B, C, H, W = x.shape
    N = C * H * W
    x2d = x.reshape(B, N)                       # contiguous reshape (free)
    bias = jnp.asarray(adjust_bias, jnp.float32).reshape(1)

    # --- batch-tile selection -------------------------------------------
    bytes_per_row = N * x2d.dtype.itemsize
    # Rows per tile sized to ~target_block_bytes, multiple of 8 (f32 sublane).
    tb = max(8, (target_block_bytes // max(bytes_per_row, 1)) // 8 * 8)
    # Keep >= ~4 grid steps when the batch allows so the BlockSpec pipeline
    # actually overlaps DMA with compute and v7x's two TCs both get work.
    step_cap = max(8, ((pl.cdiv(B, 4) + 7) // 8) * 8)
    tb = min(tb, step_cap)
    # Best-effort: even number of steps for balanced megacore sharding (v7x).
    if B > 2 * tb:
        steps = pl.cdiv(B, tb)
        if steps % 2:
            tb = max(8, ((pl.cdiv(B, steps + 1) + 7) // 8) * 8)
    if tb >= B:
        tb = B            # full-extent batch block (tiny-batch case)

    num_blocks = pl.cdiv(B, tb)   # ragged last block is masked by Pallas

    out2d = pl.pallas_call(
        _readjustment_kernel,
        out_shape=jax.ShapeDtypeStruct((B, N), x.dtype),
        grid=(num_blocks,),
        in_specs=[
            pl.BlockSpec(memory_space=pltpu.MemorySpace.SMEM),  # bias scalar
            pl.BlockSpec((tb, N), lambda i: (i, 0)),            # batch tile
        ],
        out_specs=pl.BlockSpec((tb, N), lambda i: (i, 0)),
        compiler_params=pltpu.CompilerParams(
            dimension_semantics=("parallel",),     # megacore sharding on v7x
            # 2x(in)+2x(out) buffers + one relu temp at ~6 MiB tiles ~= 30 MiB;
            # 48 MiB fits v7x's 64 MiB physical VMEM and is trivial on v5e/v6e.
            vmem_limit_bytes=48 * 1024 * 1024,
        ),
    )(bias, x2d)

    return out2d.reshape(B, C, H, W)


def _reference(x, adjust_bias):
    y = jnp.maximum(x - adjust_bias, 0.0)
    flat = y.reshape(y.shape[0], -1)
    mn = flat.min(axis=-1, keepdims=True)
    mx = flat.max(axis=-1, keepdims=True)
    return ((flat - mn) / (mx - mn + 0.0001)).reshape(x.shape)


if __name__ == "__main__":
    key = jax.random.PRNGKey(0)

    # Parameter as in nn.Parameter(torch.tensor(0.0)); use a deterministic
    # nonzero value so relu(x - bias) is exercised nontrivially.
    adjust_bias = jnp.float32(0.1)

    # Case 1: module-sized input (single full-extent block path).
    B, C, H, W = 2, 4, 16, 16
    x = jax.random.normal(key, (B, C, H, W), dtype=jnp.float32)
    out = jax.block_until_ready(readjustment(x, adjust_bias))
    ref = _reference(x, adjust_bias)
    assert out.shape == x.shape
    assert jnp.allclose(out, ref, atol=1e-5, rtol=1e-5)

    # Case 2: larger batch with a tiny block-size target to exercise the
    # multi-block grid and the unpadded ragged edge block (B=20, tb=8 -> 3
    # grid steps, last block partial and masked by Pallas).
    key2 = jax.random.PRNGKey(1)
    B2 = 20
    x2 = jax.random.normal(key2, (B2, C, H, W), dtype=jnp.float32)
    out2 = jax.block_until_ready(
        readjustment(x2, adjust_bias, target_block_bytes=32 * 1024)
    )
    ref2 = _reference(x2, adjust_bias)
    assert out2.shape == x2.shape
    assert jnp.allclose(out2, ref2, atol=1e-5, rtol=1e-5)

    print("KERNEL_OK")
</pallas_src>

<mosaic_0001>
module attributes {stable_mosaic.version = 11 : i64} {
  func.func @_readjustment_kernel(%arg0: i32, %arg1: memref<1xf32, #tpu.memory_space<smem>>, %arg2: memref<2x1024xf32, #tpu.memory_space<vmem>>, %arg3: memref<2x1024xf32, #tpu.memory_space<vmem>>) attributes {dimension_semantics = [#tpu.dimension_semantics<parallel>], iteration_bounds = array<i64: 1>, scalar_prefetch = 0 : i64, scratch_operands = 0 : i64, tpu.core_type = #tpu.core_type<tc>, window_params = [{transform_indices = @transform_0, window_bounds = array<i64: 1>}, {transform_indices = @transform_1, window_bounds = array<i64: 2, 1024>}, {transform_indices = @transform_2, window_bounds = array<i64: 2, 1024>}]} {
    %c0 = arith.constant 0 : index
    %0 = memref.load %arg1[%c0] : memref<1xf32, #tpu.memory_space<smem>>
    %c0_0 = arith.constant 0 : index
    %c0_1 = arith.constant 0 : index
    %1 = vector.load %arg2[%c0_0, %c0_1] : memref<2x1024xf32, #tpu.memory_space<vmem>>, vector<2x1024xf32>
    %2 = vector.broadcast %0 : f32 to vector<2x1024xf32>
    %3 = arith.subf %1, %2 : vector<2x1024xf32>
    %cst = arith.constant 0.000000e+00 : f32
    %4 = vector.broadcast %cst : f32 to vector<2x1024xf32>
    %5 = arith.maximumf %3, %4 : vector<2x1024xf32>
    %cst_2 = arith.constant dense<0x7F800000> : vector<2xf32>
    %6 = vector.multi_reduction <minimumf>, %5, %cst_2 [1] : vector<2x1024xf32> to vector<2xf32>
    %7 = vector.shape_cast %6 : vector<2xf32> to vector<2x1xf32>
    %cst_3 = arith.constant dense<0xFF800000> : vector<2xf32>
    %8 = vector.multi_reduction <maximumf>, %5, %cst_3 [1] : vector<2x1024xf32> to vector<2xf32>
    %9 = vector.shape_cast %8 : vector<2xf32> to vector<2x1xf32>
    %10 = arith.subf %9, %7 : vector<2x1xf32>
    %cst_4 = arith.constant 9.99999974E-5 : f32
    %11 = vector.broadcast %cst_4 : f32 to vector<2x1xf32>
    %12 = arith.addf %10, %11 : vector<2x1xf32>
    %13 = tpu.reciprocal %12 : vector<2x1xf32> -> vector<2x1xf32>
    %14 = vector.broadcast %7 : vector<2x1xf32> to vector<2x1024xf32>
    %15 = arith.subf %5, %14 : vector<2x1024xf32>
    %16 = vector.broadcast %13 : vector<2x1xf32> to vector<2x1024xf32>
    %17 = arith.mulf %15, %16 : vector<2x1024xf32>
    %c0_5 = arith.constant 0 : index
    %c0_6 = arith.constant 0 : index
    %18 = vector.load %arg3[%c0_5, %c0_6] : memref<2x1024xf32, #tpu.memory_space<vmem>>, vector<2x1024xf32>
    tpu.vector_store %arg3[%c0_5, %c0_6], %17 {strides = array<i32>} : memref<2x1024xf32, #tpu.memory_space<vmem>>, vector<2x1024xf32>,
    return
  }
  func.func @transform_0(%arg0: i32) -> i32 {
    %c0_i32 = arith.constant 0 : i32
    %c0_i32_0 = arith.constant 0 : i32
    return %c0_i32 : i32
  }
  func.func @transform_1(%arg0: i32) -> (i32, i32) {
    %c0_i32 = arith.constant 0 : i32
    %c0_i32_0 = arith.constant 0 : i32
    return %arg0, %c0_i32 : i32, i32
  }
  func.func @transform_2(%arg0: i32) -> (i32, i32) {
    %c0_i32 = arith.constant 0 : i32
    %c0_i32_0 = arith.constant 0 : i32
    return %arg0, %c0_i32 : i32, i32
  }
}

</mosaic_0001>

<bundles_post_ra>
// kernel: tpu_custom_call.1
= control target key start
LH: loop header
LB: loop body
LE: loop exit
PB: predicated region body
PF: predicated region fallthrough
CT: control target
= control target key end

     0   :  { %8 = vsyncpa [#allocation4], 0  ;;  %s270_s0 = inlined_call_operand.<no memory space> [shape: f32[1], index: 0, kind: input, shape index: {}]   ;;  %s271_s1 = inlined_call_operand.hbm [shape: f32[2,1024], index: 1, kind: input, shape index: {}]   ;;  %s272_s2 = inlined_call_operand.hbm [shape: f32[2,1024], index: 2, kind: output, shape index: {}]  }
   0x1   :  { %9 = vsyncpa [#allocation5], 0  ;;  %s208_s9 = smov [#allocation3]   ;;  %s160_s13 = scalar_lea.hbm %s271_s1, 256 }
   0x2   :  { %s18_s10 = sshll.u32 %s208_s9, 4  ;;  %p161_p0 = scmp.ne.s32.totalorder %s271_s1, %s160_s13  ;;  %s19_s10 = int_to_ptr.vmem [resolvable:$true] %s18_s10 }
   0x3   :  { %p164_p1 = scmp.lt.u32.totalorder %s160_s13, %s271_s1 }
   0x5   :  { %p166_p2 = pnand %p164_p1, %p161_p0 }
   0x7   :  { %169 = shalt.err (!%p166_p2)
}
   0x8   :  { %s170_s18 = scalar_lea.vmem %s19_s10, 256  ;;  %p175_p4 = scmp.lt.s32.totalorder %s19_s10, %s19_s10 }
   0x9   :  { %p171_p3 = scmp.ne.s32.totalorder %s19_s10, %s170_s18  ;;  %p176_p5 = scmp.lt.s32.totalorder %s170_s18, %s170_s18 }
   0xb   :  { %p177_p6 = por %p176_p5, %p175_p4 }
   0xd   :  { %p178_p7 = pnand %p177_p6, %p171_p3 }
   0xf   :  { %181 = shalt.err (!%p178_p7)
}
  0x10   :  { %21 = dma.hbm_to_vmem [thread:$0]  %s271_s1, 256, %s19_s10, [#allocation4]  }
  0x11   :  { %204 = dma.done.wait [#allocation4], 256  }
  0x12   :  { %205 = vsyncadd [#allocation4], 4294967040  ;;  %v39_v0 = vlaneseq  ;;  %v209_v1 = vmov 1983009808   ;;  %v28_v5 = vstv %s270_s0  ;;  %v26_v6 = vld [vmem:[#allocation3] sm:$0xff]  ;;  %v27_v7 = vld [vmem:[#allocation3 + $0x8] sm:$0xff] }
  0x13   :  { %v37_v2 = vunpack.c.l.s4 %v209_v1  ;;  %v29_v8 = vsub.f32 %v26_v6, %v28_v5  ;;  %v30_v9 = vsub.f32 %v27_v7, %v28_v5  ;;  %vm77_vm0 = vcmask 1041408   ;;  %s211_s0 = smov [#allocation6]  }
  0x14   :  { %v40_v4 = vshrl.u32 %v39_v0, 7  ;;  %v210_v54 = vmov 269488144   ;;  %s145_s1 = sshll.u32 %s211_s0, 4  ;;  %s146_s1 = int_to_ptr.vmem [resolvable:$true] %s145_s1 }
  0x15   :  { %v38_v3 = vunpack.c.0.s8 %v37_v2  ;;  %v31_v11 = vmax.f32 %v29_v8, 0.0  ;;  %v32_v12 = vmax.f32 %v30_v9, 0.0  ;;  %v117_v55 = vunpack.c.l.s4 %v210_v54  ;;  %s182_s23 = scalar_lea.vmem %s146_s1, 256  ;;  %p187_p9 = scmp.lt.s32.totalorder %s146_s1, %s146_s1 }
  0x16   :  { %p183_p8 = scmp.ne.s32.totalorder %s146_s1, %s182_s23  ;;  %p188_p10 = scmp.lt.s32.totalorder %s182_s23, %s182_s23 }
  0x17   :  { %v41_v10 = vsub.s32 %v38_v3, %v40_v4  ;;  %v35_v13 = vcombine.high %v31_v11, %v31_v11  ;;  %v52_v15 = vcombine.high %v32_v12, %v32_v12  ;;  %v118_v59 = vunpack.c.0.s8 %v117_v55 }
  0x18   :  { %p189_p11 = por %p188_p10, %p187_p9 }
  0x19   :  { %v42_v14 = vrot.slane %v31_v11, %v41_v10  ;;  %v59_v16 = vrot.slane %v32_v12, %v41_v10  ;;  %v49_v17 = vrot.slane %v35_v13, %v41_v10  ;;  %v66_v19 = vrot.slane %v52_v15, %v41_v10 }
  0x1a   :  { %v121_v60 = vsub.s32 %v118_v59, %v40_v4  ;;  %p190_p12 = pnand %p189_p11, %p183_p8 }
  0x1b   :  { %v50_v18 = vcombine.high %v42_v14, %v42_v14  ;;  %v67_v20 = vcombine.high %v59_v16, %v59_v16  ;;  %v78_v21 = vsel %vm77_vm0, %v42_v14, inf  ;;  %v82_v22 = vsel %vm77_vm0, %v59_v16, inf }
  0x1c   :  { %v95_v23 = vsel %vm77_vm0, %v42_v14, -inf  ;;  %v99_v24 = vsel %vm77_vm0, %v59_v16, -inf  ;;  %v51_v25 = vcombine.high %v49_v17, %v49_v17  ;;  %v68_v26 = vcombine.high %v66_v19, %v66_v19 }
  0x1d   :  { %v79_v27 = vsel %vm77_vm0, %v50_v18, inf  ;;  %v80_v28 = vsel %vm77_vm0, %v49_v17, inf  ;;  %v83_v29 = vmin.f32 %v78_v21, %v82_v22  ;;  %v84_v30 = vsel %vm77_vm0, %v67_v20, inf }
  0x1e   :  { %v86_v31 = vsel %vm77_vm0, %v66_v19, inf  ;;  %v96_v32 = vsel %vm77_vm0, %v50_v18, -inf  ;;  %v81_v33 = vsel %vm77_vm0, %v51_v25, inf  ;;  %v85_v34 = vmin.f32 %v79_v27, %v84_v30 }
  0x1f   :  { %v87_v35 = vmin.f32 %v80_v28, %v86_v31  ;;  %v88_v36 = vsel %vm77_vm0, %v68_v26, inf  ;;  %v97_v38 = vsel %vm77_vm0, %v49_v17, -inf  ;;  %v98_v39 = vsel %vm77_vm0, %v51_v25, -inf }
  0x20   :  { %v89_v37 = vmin.f32 %v81_v33, %v88_v36  ;;  %v100_v40 = vmax.f32 %v95_v23, %v99_v24  ;;  %v90_v41 = vmin.f32 %v83_v29, %v85_v34  ;;  %v101_v42 = vsel %vm77_vm0, %v67_v20, -inf }
  0x21   :  { %v103_v43 = vsel %vm77_vm0, %v66_v19, -inf  ;;  %v105_v44 = vsel %vm77_vm0, %v68_v26, -inf  ;;  %v102_v46 = vmax.f32 %v96_v32, %v101_v42 }
  0x22   :  { %v91_v45 = vmin.f32 %v87_v35, %v89_v37  ;;  %v104_v47 = vmax.f32 %v97_v38, %v103_v43  ;;  %v106_v48 = vmax.f32 %v98_v39, %v105_v44 }
  0x23   :  { %v107_v50 = vmax.f32 %v100_v40, %v102_v46 }
  0x24   :  { %v92_v49 = vmin.f32 %v90_v41, %v91_v45  ;;  %v108_v51 = vmax.f32 %v104_v47, %v106_v48 }
  0x26   :  { %93 = vmin.xlane.f32.xlu0 %v92_v49  ;;  %v109_v52 = vmax.f32 %v107_v50, %v108_v51 }
  0x2a   :  { %110 = vmax.xlane.f32.xlu0 %v109_v52 }
  0xb3   :  { %v94_v53 = vpop.xlane.xlu0 %93 }
  0xb4   :  { %v122_v61 = vrot.slane %v94_v53, %v121_v60 }
  0xb6   :  { %v124_v63 = vsub.f32 %v31_v11, %v122_v61  ;;  %v125_v0 = vsub.f32 %v32_v12, %v122_v61 }
  0xb7   :  { %v111_v56 = vpop.xlane.xlu0 %110 }
  0xb8   :  { %v112_v57 = vsub.f32 %v111_v56, %v94_v53 }
  0xba   :  { %v113_v58 = vadd.f32 0.0001, %v112_v57 }
  0xbc   :  { %158 = vrcp.f32 %v113_v58 }
  0xc6   :  { %v159_v62 = vpop.eup %158 }
  0xc7   :  { %v133_v1 = vrot.slane %v159_v62, %v121_v60 }
  0xc9   :  { %v135_v2 = vmul.f32 %v133_v1, %v124_v63  ;;  %v136_v3 = vmul.f32 %v133_v1, %v125_v0 }
  0xcb   :  { %137 = vst [vmem:[#allocation6] sm:$0xff] %v135_v2  ;;  %138 = vst [vmem:[#allocation6 + $0x8] sm:$0xff] %v136_v3 }
  0xcc   :  { %193 = shalt.err (!%p190_p12)
}
  0xcd   :  { %s194_s26 = scalar_lea.hbm %s272_s2, 256 }
  0xce   :  { %p195_p13 = scmp.ne.s32.totalorder %s272_s2, %s194_s26  ;;  %p198_p0 = scmp.lt.u32.totalorder %s194_s26, %s272_s2 }
  0xd0   :  { %p200_p1 = pnand %p198_p0, %p195_p13 }
  0xd2   :  { %203 = shalt.err (!%p200_p1)
}
  0xd3   :  { %148 = dma.vmem_to_hbm [thread:$0]  %s146_s1, 256, %s272_s2, [#allocation5]  }
  0xd4   :  { %206 = dma.done.wait [#allocation5], 256  }
  0xd5   :  { %207 = vsyncadd [#allocation5], 4294967040 }
  0xd6   :  { %152 = vsyncpa [#allocation4], 1 }
  0xd7   :  { %153 = vsyncpa [#allocation5], 1 }

</bundles_post_ra>
